<compile_context>
chip_gen: v7x
topology: tpu7x:2x2x1
jax: 0.10.0
libtpu: 0.0.40
codegen_flags: <defaults>
</compile_context>

<pallas_src>
import functools

import numpy as np

import jax
import jax.numpy as jnp
from jax import lax
from jax.experimental import pallas as pl
from jax.experimental.pallas import tpu as pltpu


# Contract dim 0 of both operands:  dot_general(A, B, _DN_TT) == A.T @ B
_DN_TT = (((0,), (0,)), ((), ()))


def _eye(n, dtype=jnp.float32):
    r = lax.broadcasted_iota(jnp.int32, (n, n), 0)
    c = lax.broadcasted_iota(jnp.int32, (n, n), 1)
    return (r == c).astype(dtype)


def _lmi_kernel(lip_ref, w_ref, t_ref, out_ref, *, beta, n):
    lip = lip_ref[pl.program_id(0)]     # per-problem scalar (SMEM)
    w = w_ref[...]                      # (n, n)  == W_out for this problem
    t = t_ref[...]                      # (n, n)  == T     for this problem

    w_neg = -w                          # feeds the (2,1) block and both matmuls
    bt = beta * t                       # beta folded once into the operand
    eye_n = _eye(n)

    # One MXU pass: (-W)^T @ [beta*T | I]  ->  [-beta*W^T T | -W^T]
    ac = lax.dot_general(w_neg, jnp.concatenate([bt, eye_n], axis=1),
                         dimension_numbers=_DN_TT,
                         preferred_element_type=jnp.float32)        # (n, 2n)
    # Remaining MXU call: (beta*T)^T @ (-W) = -beta*T^T W  (no symmetry assumed)
    b10 = lax.dot_general(bt, w_neg, dimension_numbers=_DN_TT,
                          preferred_element_type=jnp.float32)       # (n, n)

    # -lip * I via a single iota-compare select.
    r = lax.broadcasted_iota(jnp.int32, (n, n), 0)
    c = lax.broadcasted_iota(jnp.int32, (n, n), 1)
    neg_lip_eye = jnp.where(r == c, -lip, jnp.float32(0.0))

    zeros_nn = jnp.zeros((n, n), jnp.float32)

    # Three sublane-aligned row-band stores (offsets 0 / n / 2n, multiples of 8).
    out_ref[0:n, :] = jnp.concatenate([neg_lip_eye, ac[:, :n], zeros_nn], axis=1)
    out_ref[n:2 * n, :] = jnp.concatenate([b10, 2.0 * t, ac[:, n:]], axis=1)
    out_ref[2 * n:3 * n, :] = jnp.concatenate([zeros_nn, w_neg, eye_n], axis=1)


def lipschitz1_forward_batched(lip, w_out, T, *, beta):
    """Builds B independent -M matrices in one pallas_call (grid over B)."""
    B, n_out, n_hid = w_out.shape
    assert n_out == n_hid, "forward() only shape-checks when n_in==n_hid==n_out"
    n = n_hid
    nM = 3 * n
    assert T.shape == (B, n, n) and lip.shape == (B,)

    kernel = functools.partial(_lmi_kernel, beta=float(beta), n=n)
    flops = B * 6 * n ** 3                                 # two small matmuls / problem
    bytes_accessed = B * 4 * (2 * n * n + nM * nM + 1)

    return pl.pallas_call(
        kernel,
        grid=(B,),
        in_specs=[
            pl.BlockSpec(memory_space=pltpu.MemorySpace.SMEM),   # lip: (B,) scalars
            pl.BlockSpec((None, n, n), lambda b: (b, 0, 0)),     # w_out
            pl.BlockSpec((None, n, n), lambda b: (b, 0, 0)),     # T
        ],
        out_specs=pl.BlockSpec((None, nM, nM), lambda b: (b, 0, 0)),
        out_shape=jax.ShapeDtypeStruct((B, nM, nM), jnp.float32),
        compiler_params=pltpu.CompilerParams(
            dimension_semantics=("parallel",)),                  # ~2x on v7x (2 TC/chip)
        cost_estimate=pl.CostEstimate(flops=flops, transcendentals=0,
                                      bytes_accessed=bytes_accessed),
    )(lip, w_out, T)


def lipschitz1_forward(lip, w_out, T, *, beta):
    """Module-faithful single-layer forward (lip: (1,), w_out/T: (n, n))."""
    out = lipschitz1_forward_batched(jnp.reshape(lip, (1,)),
                                     w_out[None], T[None], beta=beta)
    return out[0]          # size-1 leading-dim squeeze (layout-only under jit)


def check_T_spd(T):
    """One-time positivity check, hoisted out of the jitted hot path.

    TODO(synk): torch.linalg.eig (general, non-symmetric eigendecomposition)
    has no Pallas/TPU lowering; the check runs host-side (numpy) once at init,
    matching the torch semantics Re(eig(T)) > 0 without assuming symmetry.
    """
    eig_val = np.linalg.eigvals(np.asarray(jax.device_get(T)))
    if not bool(np.all(eig_val.real > 0)):
        raise AssertionError("T is not SDP")


def _reference(lip_scalar, w_out, T, beta):
    n_out, n_hid = w_out.shape
    n_in = n_hid
    m12 = beta * w_out.T @ T
    row0 = jnp.concatenate(
        [lip_scalar * jnp.eye(n_in), m12, jnp.zeros((n_in, n_out))], axis=1)
    row1 = jnp.concatenate([m12.T, -2.0 * T, w_out.T], axis=1)
    row2 = jnp.concatenate(
        [jnp.zeros((n_out, n_in)), w_out, -jnp.eye(n_out)], axis=1)
    return -jnp.concatenate([row0, row1, row2], axis=0)


if __name__ == "__main__":
    key = jax.random.PRNGKey(0)
    k_w, k_t, k_l = jax.random.split(key, 3)

    N = 32          # n_in == n_hid == n_out (required by the module's forward())
    B = 4           # batch of independent layers built in one pallas_call
    beta = 1.0      # upper_slope

    # Deterministic synthetic parameters (the cvxpy SDP solve in __init__ is
    # replaced by synthetic SPD T's and stand-in sqrt(lip) values).
    w_out = jax.random.normal(k_w, (B, N, N), dtype=jnp.float32)
    a = jax.random.normal(k_t, (B, N, N), dtype=jnp.float32)
    T = jnp.einsum("bij,bkj->bik", a, a) / N + \
        1e-3 * jnp.eye(N, dtype=jnp.float32)[None]
    lip = 1.0 + jax.random.uniform(k_l, (B,), dtype=jnp.float32)

    # One-time SPD checks (init-style; not in the jitted forward).
    for i in range(B):
        check_T_spd(T[i])

    # Batched path: all B layer matrices from one kernel launch.
    fwd_b = jax.jit(lipschitz1_forward_batched, static_argnames=("beta",))
    out_b = jax.block_until_ready(fwd_b(lip, w_out, T, beta=beta))

    ref_b = jnp.stack([_reference(lip[i], w_out[i], T[i], beta) for i in range(B)])
    if not jnp.allclose(out_b, ref_b, atol=1e-4, rtol=1e-4):
        raise AssertionError("Pallas batched output mismatch vs reference")

    # Single-layer (module-faithful) path.
    fwd1 = jax.jit(lipschitz1_forward, static_argnames=("beta",))
    out1 = jax.block_until_ready(fwd1(lip[:1], w_out[0], T[0], beta=beta))
    if not jnp.allclose(out1, ref_b[0], atol=1e-4, rtol=1e-4):
        raise AssertionError("Pallas single-layer output mismatch vs reference")

    print("KERNEL_OK")
</pallas_src>

<mosaic_0001>
module attributes {stable_mosaic.version = 11 : i64} {
  func.func @_lmi_kernel(%arg0: i32, %arg1: memref<4xf32, #tpu.memory_space<smem>>, %arg2: memref<1x32x32xf32, #tpu.memory_space<vmem>>, %arg3: memref<1x32x32xf32, #tpu.memory_space<vmem>>, %arg4: memref<1x96x96xf32, #tpu.memory_space<vmem>>) attributes {dimension_semantics = [#tpu.dimension_semantics<parallel>], iteration_bounds = array<i64: 4>, scalar_prefetch = 0 : i64, scratch_operands = 0 : i64, tpu.core_type = #tpu.core_type<tc>, window_params = [{transform_indices = @transform_0, window_bounds = array<i64: 4>}, {transform_indices = @transform_1, window_bounds = array<i64: 1, 32, 32>}, {transform_indices = @transform_2, window_bounds = array<i64: 1, 32, 32>}, {transform_indices = @transform_3, window_bounds = array<i64: 1, 96, 96>}]} {
    %0 = arith.index_cast %arg0 : i32 to index
    %1 = memref.load %arg1[%0] : memref<4xf32, #tpu.memory_space<smem>>
    %c0 = arith.constant 0 : index
    %c0_0 = arith.constant 0 : index
    %c0_1 = arith.constant 0 : index
    %2 = vector.load %arg2[%c0, %c0_0, %c0_1] : memref<1x32x32xf32, #tpu.memory_space<vmem>>, vector<1x32x32xf32>
    %3 = vector.shape_cast %2 : vector<1x32x32xf32> to vector<32x32xf32>
    %c0_2 = arith.constant 0 : index
    %c0_3 = arith.constant 0 : index
    %c0_4 = arith.constant 0 : index
    %4 = vector.load %arg3[%c0_2, %c0_3, %c0_4] : memref<1x32x32xf32, #tpu.memory_space<vmem>>, vector<1x32x32xf32>
    %5 = vector.shape_cast %4 : vector<1x32x32xf32> to vector<32x32xf32>
    %cst = arith.constant 0.000000e+00 : f32
    %6 = vector.broadcast %cst : f32 to vector<32x32xf32>
    %7 = arith.subf %6, %3 : vector<32x32xf32>
    %cst_5 = arith.constant 1.000000e+00 : f32
    %8 = vector.broadcast %cst_5 : f32 to vector<32x32xf32>
    %9 = arith.mulf %8, %5 : vector<32x32xf32>
    %10 = tpu.iota {dimensions = array<i32: 0>} : vector<32x32xi32>
    %11 = tpu.iota {dimensions = array<i32: 1>} : vector<32x32xi32>
    %12 = arith.cmpi eq, %10, %11 : vector<32x32xi32>
    %13 = arith.extui %12 : vector<32x32xi1> to vector<32x32xi32>
    %14 = arith.sitofp %13 : vector<32x32xi32> to vector<32x32xf32>
    %15 = tpu.concatenate %9, %14 in 1 : vector<32x32xf32>, vector<32x32xf32> -> vector<32x64xf32>
    %cst_6 = arith.constant dense<0.000000e+00> : vector<32x64xf32>
    %16 = tpu.matmul %7, %15, %cst_6 {dimension_numbers = #tpu.dot_dimension_numbers<[0], [0], [1], [1], [0, 1, 1, 1], [], []>} : vector<32x32xf32>, vector<32x64xf32>, vector<32x64xf32> -> vector<32x64xf32>
    %cst_7 = arith.constant dense<0.000000e+00> : vector<32x32xf32>
    %17 = tpu.matmul %9, %7, %cst_7 {dimension_numbers = #tpu.dot_dimension_numbers<[0], [0], [1], [1], [0, 1, 1, 1], [], []>} : vector<32x32xf32>, vector<32x32xf32>, vector<32x32xf32> -> vector<32x32xf32>
    %18 = tpu.iota {dimensions = array<i32: 0>} : vector<32x32xi32>
    %19 = tpu.iota {dimensions = array<i32: 1>} : vector<32x32xi32>
    %20 = arith.cmpi eq, %18, %19 : vector<32x32xi32>
    %cst_8 = arith.constant 0.000000e+00 : f32
    %21 = arith.subf %cst_8, %1 : f32
    %cst_9 = arith.constant 0.000000e+00 : f32
    %22 = vector.broadcast %21 : f32 to vector<32x32xf32>
    %23 = vector.broadcast %cst_9 : f32 to vector<32x32xf32>
    %24 = arith.select %20, %22, %23 : vector<32x32xi1>, vector<32x32xf32>
    %cst_10 = arith.constant 0.000000e+00 : f32
    %25 = vector.broadcast %cst_10 : f32 to vector<32x32xf32>
    %26 = vector.extract_strided_slice %16 {offsets = [0, 0], sizes = [32, 32], strides = [1, 1]} : vector<32x64xf32> to vector<32x32xf32>
    %27 = tpu.concatenate %24, %26, %25 in 1 : vector<32x32xf32>, vector<32x32xf32>, vector<32x32xf32> -> vector<32x96xf32>
    %c0_11 = arith.constant 0 : index
    %c0_12 = arith.constant 0 : index
    %c0_13 = arith.constant 0 : index
    %28 = vector.load %arg4[%c0_11, %c0_12, %c0_13] : memref<1x96x96xf32, #tpu.memory_space<vmem>>, vector<1x32x96xf32>
    %29 = vector.shape_cast %28 : vector<1x32x96xf32> to vector<32x96xf32>
    %30 = vector.shape_cast %27 : vector<32x96xf32> to vector<1x32x96xf32>
    tpu.vector_store %arg4[%c0_11, %c0_12, %c0_13], %30 {strides = array<i32>} : memref<1x96x96xf32, #tpu.memory_space<vmem>>, vector<1x32x96xf32>,
    %cst_14 = arith.constant 2.000000e+00 : f32
    %31 = vector.broadcast %cst_14 : f32 to vector<32x32xf32>
    %32 = arith.mulf %31, %5 : vector<32x32xf32>
    %33 = vector.extract_strided_slice %16 {offsets = [0, 32], sizes = [32, 32], strides = [1, 1]} : vector<32x64xf32> to vector<32x32xf32>
    %34 = tpu.concatenate %17, %32, %33 in 1 : vector<32x32xf32>, vector<32x32xf32>, vector<32x32xf32> -> vector<32x96xf32>
    %c0_15 = arith.constant 0 : index
    %c32 = arith.constant 32 : index
    %c0_16 = arith.constant 0 : index
    %35 = vector.load %arg4[%c0_15, %c32, %c0_16] : memref<1x96x96xf32, #tpu.memory_space<vmem>>, vector<1x32x96xf32>
    %36 = vector.shape_cast %35 : vector<1x32x96xf32> to vector<32x96xf32>
    %37 = vector.shape_cast %34 : vector<32x96xf32> to vector<1x32x96xf32>
    tpu.vector_store %arg4[%c0_15, %c32, %c0_16], %37 {strides = array<i32>} : memref<1x96x96xf32, #tpu.memory_space<vmem>>, vector<1x32x96xf32>,
    %38 = tpu.concatenate %25, %7, %14 in 1 : vector<32x32xf32>, vector<32x32xf32>, vector<32x32xf32> -> vector<32x96xf32>
    %c0_17 = arith.constant 0 : index
    %c64 = arith.constant 64 : index
    %c0_18 = arith.constant 0 : index
    %39 = vector.load %arg4[%c0_17, %c64, %c0_18] : memref<1x96x96xf32, #tpu.memory_space<vmem>>, vector<1x32x96xf32>
    %40 = vector.shape_cast %39 : vector<1x32x96xf32> to vector<32x96xf32>
    %41 = vector.shape_cast %38 : vector<32x96xf32> to vector<1x32x96xf32>
    tpu.vector_store %arg4[%c0_17, %c64, %c0_18], %41 {strides = array<i32>} : memref<1x96x96xf32, #tpu.memory_space<vmem>>, vector<1x32x96xf32>,
    return
  }
  func.func @transform_0(%arg0: i32) -> i32 {
    %c0_i32 = arith.constant 0 : i32
    %c0_i32_0 = arith.constant 0 : i32
    return %c0_i32 : i32
  }
  func.func @transform_1(%arg0: i32) -> (i32, i32, i32) {
    %c0_i32 = arith.constant 0 : i32
    %c0_i32_0 = arith.constant 0 : i32
    %c0_i32_1 = arith.constant 0 : i32
    return %arg0, %c0_i32, %c0_i32_0 : i32, i32, i32
  }
  func.func @transform_2(%arg0: i32) -> (i32, i32, i32) {
    %c0_i32 = arith.constant 0 : i32
    %c0_i32_0 = arith.constant 0 : i32
    %c0_i32_1 = arith.constant 0 : i32
    return %arg0, %c0_i32, %c0_i32_0 : i32, i32, i32
  }
  func.func @transform_3(%arg0: i32) -> (i32, i32, i32) {
    %c0_i32 = arith.constant 0 : i32
    %c0_i32_0 = arith.constant 0 : i32
    %c0_i32_1 = arith.constant 0 : i32
    return %arg0, %c0_i32, %c0_i32_0 : i32, i32, i32
  }
}

</mosaic_0001>

<bundles_post_ra>
// kernel: lipschitz1_forward_batched.1
= control target key start
LH: loop header
LB: loop body
LE: loop exit
PB: predicated region body
PF: predicated region fallthrough
CT: control target
= control target key end

     0   :  { %8 = vsyncpa [#allocation5], 0  ;;  %s1551_s0 = inlined_call_operand.hbm [shape: f32[4], index: 0, kind: input, shape index: {}]   ;;  %s1552_s1 = inlined_call_operand.hbm [shape: f32[4,32,32], index: 1, kind: input, shape index: {}]   ;;  %s1553_s2 = inlined_call_operand.hbm [shape: f32[4,32,32], index: 2, kind: input, shape index: {}]   ;;  %s1554_s3 = inlined_call_operand.hbm [shape: f32[4,96,96], index: 3, kind: output, shape index: {}]  }
   0x1   :  { %9 = vsyncpa [#allocation3], 0 }
   0x2   :  { %11 = vsyncpa [#allocation3 + $0x1], 0 }
   0x3   :  { %12 = vsyncpa [#allocation8], 0 }
   0x4   :  { %14 = vsyncpa [#allocation8 + $0x1], 0 }
   0x5   :  { %15 = vsyncpa [#allocation4], 0 }
   0x6   :  { %17 = vsyncpa [#allocation4 + $0x1], 0  ;;  %s1144_s12 = smov 0   ;;  %s1146_s13 = smov 0  }
   0x7   :  { %s1148_s14 = smov 0   ;;  %s1150_s15 = smov 0  }
   0x8 LB: > { %s1165_s16 = sadd.s32 4294967295, %s1111_s15   ;;  %s782_s17 = sadd.s32 4294967294, %s1111_s15   ;;  %s1111_s15 = sphi %s1150_s15, %s1572_s15   ;;  %s1107_s14 = sphi %s1148_s14, %s1571_s14   ;;  %s1103_s13 = sphi %s1146_s13, %s1570_s13   ;;  %s1099_s12 = sphi %s1144_s12, %s1569_s12  }
   0x9   : > { %s1169_s18 = sadd.s32 1, %s1111_s15   ;;  %s51_s19 = sadd.s32 1, %s1107_s14 }
   0xa   : > { %s48_s20 = ssub.s32 %s1111_s15, %s1169_s18  ;;  %p58_p0 = scmp.ne.s32.totalorder %s1107_s14, %s1103_s13 }
   0xb   : > { %p49_p1 = scmp.eq.s32.totalorder %s48_s20, 0  ;;  %p59_p2 = scmp.eq.s32.totalorder %s1111_s15, 0 }
   0xc   : > { %p64_p3 = scmp.ne.s32.totalorder %s1103_s13, %s1099_s12  ;;  %p1555_p4 = scmp.eq.s32.totalorder %s1165_s16, 0 }
   0xd   : > { %s1181_s21 = scalar_select %p49_p1, %s1107_s14, %s51_s19  }
   0xe   : > { %p1183_p5 = por %p59_p2, %p58_p0  ;;  %p1189_p6 = por %p1555_p4, %p64_p3 }
   0xf   : > { %p114_p7 = scmp.eq.s32.totalorder %s1165_s16, 3  ;;  %p120_p8 = scmp.eq.s32.totalorder %s782_s17, 3 }
  0x10   : > { %s1559_s23 = scalar_select %p1189_p6, 1, 0 }
  0x11   : > { %p783_p9 = scmp.ge.s32.totalorder %s1111_s15, 1  ;;  %p127_p10 = scmp.lt.s32.totalorder %s1111_s15, 5 }
  0x12   : > { %p1196_p11 = por %p114_p7, %p58_p0  ;;  %p1200_p12 = por %p120_p8, %p64_p3 }
  0x13   : > { %p1204_p13 = pnand %p783_p9, %p127_p10  ;;  %p901_p2 = scmp.lt.s32.totalorder %s1111_s15, 4 }
  0x14   : > { %s1560_s24 = scalar_select %p1196_p11, 1, 0 }
  0x15   : > { %s1561_s25 = scalar_select %p1200_p12, 1, 0 }
  0x16   : > { %p885_p1 = pneg %p1204_p13  ;;  %s1212_s27 = sand.u32 1, %s1107_s14  }
  0x17   : > { %s811_s28 = sshll.u32 %s1111_s15, 9  ;;  %p1219_p7 = pnand %p901_p2, %p1183_p5 }
  0x18   : > { %p886_p0 = pnand %p885_p1, %p1555_p4  ;;  %s786_s30 = sshll.u32 %s1212_s27, 5 }
  0x19   : > { %s964_s6 = scalar_lea.hbm %s1551_s0, 16 }
  0x1a   : > { %p965_p3 = scmp.ne.s32.totalorder %s1551_s0, %s964_s6  ;;  %p966_p8 = pneg %p886_p0 }
  0x1b   : > { %p971_p1 = scmp.lt.u32.totalorder %s964_s6, %s1551_s0 }
  0x1c   : > { %p967_p9 = pnand %p966_p8, %p965_p3 }
  0x1e   : > { %p968_p10 = pneg %p967_p9 }
  0x20   : > { %p973_p5 = pnand %p971_p1, %p968_p10 }
  0x22   : > { %976 = shalt.err (!%p973_p5)
}
  0x23   : > { %s1113_s11 = smov [#allocation2]   ;;  %s1241_s4 = scalar_lea.hbm %s1552_s1, %s811_s28 }
  0x24   : > { %888 = dma.hbm_to_smem (!%p886_p0), %s1551_s0, 16, %s1113_s11, [#allocation5]  }
  0x25   : > { %s153_s5 = scalar_lea.vmem [#allocation6], %s786_s30  ;;  %s150_s7 = scalar_lea.sflag [#allocation3], %s1212_s27 }
  0x26   : > { %s160_s6 = sshll.u32 %s153_s5, 4  ;;  %s977_s8 = scalar_lea.hbm %s1241_s4, 512  ;;  %s1245_s6 = int_to_ptr.vmem [resolvable:$true] %s160_s6 }
  0x27   : > { %p978_p2 = scmp.ne.s32.totalorder %s1241_s4, %s977_s8  ;;  %p979_p0 = pneg %p1219_p7 }
  0x28   : > { %s982_s11 = scalar_lea.hbm %s1552_s1, 2048  ;;  %p983_p9 = scmp.lt.u32.totalorder %s1241_s4, %s1552_s1 }
  0x29   : > { %p980_p3 = pnand %p979_p0, %p978_p2  ;;  %p984_p10 = scmp.lt.u32.totalorder %s982_s11, %s977_s8 }
  0x2a   : > { %p986_p5 = scmp.lt.u32.totalorder %s977_s8, %s1241_s4 }
  0x2b   : > { %p981_p8 = pneg %p980_p3  ;;  %p985_p1 = por %p984_p10, %p983_p9 }
  0x2d   : > { %p987_p4 = por %p986_p5, %p985_p1 }
  0x2f   : > { %p988_p12 = pnand %p987_p4, %p981_p8 }
  0x31   : > { %991 = shalt.err (!%p988_p12)
}
  0x32   : > { %s992_s20 = scalar_lea.vmem %s1245_s6, 512  ;;  %s1114_s22 = smov [#allocation6]  }
  0x33   : > { %p993_p2 = scmp.ne.s32.totalorder %s1245_s6, %s992_s20  ;;  %s997_s5 = sshll.u32 %s1114_s22, 4  ;;  %s998_s5 = int_to_ptr.vmem [resolvable:$false] %s997_s5 }
  0x34   : > { %s999_s9 = scalar_lea.vmem %s998_s5, 1024  ;;  %p1000_p6 = scmp.lt.s32.totalorder %s1245_s6, %s998_s5 }
  0x35   : > { %p995_p3 = pnand %p993_p2, %p979_p0  ;;  %p1001_p9 = scmp.lt.s32.totalorder %s999_s9, %s992_s20 }
  0x37   : > { %p996_p11 = pneg %p995_p3  ;;  %p1002_p10 = por %p1001_p9, %p1000_p6 }
  0x39   : > { %p1003_p1 = pnand %p1002_p10, %p996_p11 }
  0x3b   : > { %1006 = shalt.err (!%p1003_p1)
}
  0x3c   : > { %s1115_s8 = smov 128   ;;  %s1116_s10 = smov 8  }
  0x3d   : > { %892 = dma.hbm_to_vmem [thread:$0]  (!%p1219_p7), %s1241_s4, 512, %s1245_s6, %s150_s7, %s1115_s8, %s1115_s8, %s1116_s10  }
  0x3e   : > { %s1283_s19 = scalar_lea.hbm %s1553_s2, %s811_s28  ;;  %s174_s20 = scalar_lea.vmem [#allocation7], %s786_s30 }
  0x3f   : > { %s181_s22 = sshll.u32 %s174_s20, 4  ;;  %s171_s5 = scalar_lea.sflag [#allocation8], %s1212_s27  ;;  %s1287_s22 = int_to_ptr.vmem [resolvable:$true] %s181_s22 }
  0x40   : > { %s1007_s9 = scalar_lea.hbm %s1283_s19, 512  ;;  %s1012_s28 = scalar_lea.hbm %s1553_s2, 2048 }
  0x41   : > { %p1008_p4 = scmp.ne.s32.totalorder %s1283_s19, %s1007_s9  ;;  %p1013_p12 = scmp.lt.u32.totalorder %s1283_s19, %s1553_s2 }
  0x42   : > { %p1014_p8 = scmp.lt.u32.totalorder %s1012_s28, %s1007_s9  ;;  %p1016_p2 = scmp.lt.u32.totalorder %s1007_s9, %s1283_s19 }
  0x43   : > { %p1010_p6 = pnand %p1008_p4, %p979_p0 }
  0x44   : > { %p1015_p5 = por %p1014_p8, %p1013_p12 }
  0x45   : > { %p1011_p11 = pneg %p1010_p6 }
  0x46   : > { %p1017_p3 = por %p1016_p2, %p1015_p5 }
  0x48   : > { %p1018_p9 = pnand %p1017_p3, %p1011_p11 }
  0x4a   : > { %1021 = shalt.err (!%p1018_p9)
}
  0x4b   : > { %s1022_s30 = scalar_lea.vmem %s1287_s22, 512  ;;  %s1117_s17 = smov [#allocation7]  }
  0x4c   : > { %p1023_p10 = scmp.ne.s32.totalorder %s1287_s22, %s1022_s30  ;;  %s1027_s20 = sshll.u32 %s1117_s17, 4  ;;  %s1028_s20 = int_to_ptr.vmem [resolvable:$false] %s1027_s20 }
  0x4d   : > { %s1029_s4 = scalar_lea.vmem %s1028_s20, 1024  ;;  %p1030_p6 = scmp.lt.s32.totalorder %s1287_s22, %s1028_s20 }
  0x4e   : > { %p1025_p1 = pnand %p1023_p10, %p979_p0  ;;  %p1031_p12 = scmp.lt.s32.totalorder %s1029_s4, %s1022_s30 }
  0x50   : > { %p1026_p4 = pneg %p1025_p1  ;;  %p1032_p8 = por %p1031_p12, %p1030_p6 }
  0x52   : > { %p1033_p5 = pnand %p1032_p8, %p1026_p4 }
  0x54   : > { %1036 = shalt.err (!%p1033_p5)
}
  0x55   : > { %895 = dma.hbm_to_vmem [thread:$0]  (!%p1219_p7), %s1283_s19, 512, %s1287_s22, %s171_s5, %s1115_s8, %s1115_s8, %s1116_s10  }
  0x56   : > { %193 = sbr.rel (%p1204_p13) target bundleno = 633 (0x279), region = 32  ;;  %p1564_p0 = scmp.eq.s32.totalorder (!%p1204_p13), %s1165_s16, 0 }
  0x5d   : > { %1082 = dma.done.wait (%p1564_p0), [#allocation5], 16   ;;  %p1565_p11 = pmov %p1564_p0 }
  0x5e   : > { %s1325_s29 = sand.u32 1, %s1103_s13   ;;  %p1566_p7 = scmp.ne.s32.totalorder %s1559_s23, 0 }
  0x5f   : > { %1084 = vsyncadd (%p1565_p11), [#allocation5], 4294967280  ;;  %s794_s9 = sshll.u32 %s1325_s29, 5  ;;  %s200_s27 = scalar_lea.sflag [#allocation3], %s1325_s29 }
  0x60   : > { %s1329_s6 = scalar_lea.vmem [#allocation6], %s794_s9 }
  0x61   : > { %1086 = dma.done.wait (%p1566_p7), %s200_s27, 512  }
  0x62   : > { %1088 = vsyncadd (%p1566_p7), %s200_s27, 4294966784  ;;  %s209_s26 = scalar_lea.sflag [#allocation8], %s1325_s29  ;;  %s1336_s8 = scalar_lea.vmem [#allocation7], %s794_s9 }
  0x63   : > { %1090 = dma.done.wait (%p1566_p7), %s209_s26, 512  }
  0x64   : > { %1092 = vsyncadd (%p1566_p7), %s209_s26, 4294966784 }
  0x65   : > { %217 = sfence }
  0x66   : > { %v242_v0 = vld [vmem:[%s1329_s6] sm:$0xff]  ;;  %v243_v1 = vld [vmem:[%s1329_s6 + $0x8] sm:$0xff]  ;;  %v254_v2 = vlaneseq  ;;  %v244_v8 = vld [vmem:[%s1329_s6 + $0x10] sm:$0xff]  ;;  %v1118_v11 = vmov 0.0   ;;  %s1119_s23 = smov 32   ;;  %vm289_vm4 = vcmask 261120  }
  0x67   : > { %v1344_v3 = vsub.f32 0.0, %v242_v0  ;;  %v1351_v6 = vsub.f32 0.0, %v243_v1  ;;  %v1378_v14 = vsub.f32 0.0, %v244_v8  ;;  %v245_v18 = vld [vmem:[%s1329_s6 + $0x18] sm:$0xff]  ;;  %v246_v22 = vld [vmem:[%s1336_s8] sm:$0xff]  ;;  %v247_v24 = vld [vmem:[%s1336_s8 + $0x8] sm:$0xff] }
  0x68   : > { %v1346_v4 = vshrl.u32 %v254_v2, 7  ;;  %v1348_v5 = vand.u32 127, %v254_v2  ;;  %v1394_v20 = vsub.f32 0.0, %v245_v18  ;;  %v248_v25 = vld [vmem:[%s1336_s8 + $0x10] sm:$0xff]  ;;  %v249_v26 = vld [vmem:[%s1336_s8 + $0x18] sm:$0xff]  ;;  %v588_v51 = vmul.f32 2.0, %v246_v22 }
  0x69   : > { %294 = vxpose.xlu1.b32.start [1/4] (short) (narrow) %v1344_v3, 32  ;;  %v865_v21 = vpack.c.bf16 %v1351_v6, %v1344_v3  ;;  %v589_v52 = vmul.f32 2.0, %v247_v24  ;;  %v590_v53 = vmul.f32 2.0, %v248_v25  ;;  %v591_v54 = vmul.f32 2.0, %v249_v26  ;;  %s1120_s10 = smov 64   ;;  %s241_s19 = sld [smem:[#allocation2 + %s1165_s16]] }
  0x6a   : > { %v1354_v7 = vadd.s32 8, %v1346_v4  ;;  %vm261_vm0 = vcmp.eq.s32.totalorder %v1346_v4, %v1348_v5  ;;  %v1360_v9 = vadd.s32 16, %v1346_v4  ;;  %v1363_v10 = vadd.s32 24, %v1346_v4  ;;  %s873_s5 = smul.u32 96, %s1325_s29  ;;  %s661_s20 = scalar_lea.sflag [#allocation4], %s1325_s29 }
  0x6b   : > { %v796_v12 = vsel %vm261_vm0, 1.0, %v1118_v11  ;;  %866 = vmatprep.subr.bf16.mxu1 %v865_v21  ;;  %v869_v23 = vpack.c.bf16 %v1394_v20, %v1378_v14  ;;  %vm578_vm5 = vcmask 523264   ;;  %vm583_vm6 = vcmask 785408   ;;  %s874_s7 = smul.u32 1536, %s1165_s16  ;;  %p1567_p2 = scmp.ne.s32.totalorder %s1560_s24, 0 }
  0x6c   : > { %vm262_vm1 = vcmp.eq.s32.totalorder %v1354_v7, %v1348_v5  ;;  %vm263_vm2 = vcmp.eq.s32.totalorder %v1360_v9, %v1348_v5  ;;  %vm264_vm3 = vcmp.eq.s32.totalorder %v1363_v10, %v1348_v5  ;;  %868 = vmatpush3.bf16.msra.mxu1 %v865_v21  ;;  %s1447_s28 = scalar_lea.vmem [#allocation9], %s873_s5  ;;  %s1121_s9 = smov [#allocation9]  }
  0x6d   : > { %295 = vxpose.xlu1.b32.cont [2/4] (short) (narrow) %v1351_v6, 32  ;;  %v797_v13 = vsel %vm262_vm1, 1.0, %v1118_v11  ;;  %v798_v15 = vsel %vm263_vm2, 1.0, %v1118_v11  ;;  %v799_v16 = vsel %vm264_vm3, 1.0, %v1118_v11  ;;  %870 = vmatprep.subr.bf16.mxu1 %v869_v23  ;;  %s674_s11 = sshll.u32 %s1447_s28, 4  ;;  %s1498_s17 = scalar_lea.hbm %s1554_s3, %s874_s7  ;;  %s1500_s11 = int_to_ptr.vmem [resolvable:$true] %s674_s11 }
  0x6e   : > { %v1386_v17 = vpack.i.bf16 %v797_v13, %v796_v12  ;;  %v1391_v19 = vpack.i.bf16 %v799_v16, %v798_v15  ;;  %s1037_s4 = scalar_lea.vmem %s1500_s11, 1536  ;;  %s1041_s27 = sshll.u32 %s1121_s9, 4  ;;  %s1042_s27 = int_to_ptr.vmem [resolvable:$false] %s1041_s27 }
  0x6f   : > { %s552_s22 = ssub.f32 0.0, %s241_s19  ;;  %p1038_p13 = scmp.ne.s32.totalorder %s1500_s11, %s1037_s4 }
  0x70   : > { %945 = vrot.lane.b32.xlu0 %v1386_v17, %s1119_s23  ;;  %872 = vmatpush3.bf16.msra.mxu1 %v869_v23  ;;  %s1043_s6 = scalar_lea.vmem %s1042_s27, 3072  ;;  %p1044_p10 = scmp.lt.s32.totalorder %s1500_s11, %s1042_s27 }
  0x71   : > { %296 = vxpose.xlu1.b32.cont [3/4] (short) (narrow) %v1378_v14, 32  ;;  %v553_v59 = vstv %s552_s22  ;;  %p1039_p3 = pnand %p1038_p13, %p1567_p2  ;;  %p1045_p1 = scmp.lt.s32.totalorder %s1043_s6, %s1037_s4 }
  0x72   : > { %v555_v60 = vsel %vm262_vm1, %v553_v59, 0.0  ;;  %v554_v0 = vsel %vm261_vm0, %v553_v59, 0.0  ;;  %v557_v4 = vsel %vm264_vm3, %v553_v59, 0.0 }
  0x73   : > { %p1040_p9 = pneg %p1039_p3  ;;  %p1046_p4 = por %p1045_p1, %p1044_p10 }
  0x74   : > { %950 = vrot.lane.b32.xlu0 %v1391_v19, %s1119_s23 }
  0x75   : > { %297 = vxpose.xlu1.b32.end [4/4] (short) (narrow) %v1394_v20, 32  ;;  %p1047_p6 = pnand %p1046_p4, %p1040_p9 }
  0x92   : > { %423 = vxpose.xlu0.b32.start [1/4] (short) (narrow) %v246_v22, 32 }
  0x96   : > { %424 = vxpose.xlu0.b32.cont [2/4] (short) (narrow) %v247_v24, 32 }
  0x9a   : > { %425 = vxpose.xlu0.b32.cont [3/4] (short) (narrow) %v248_v25, 32 }
  0x9e   : > { %426 = vxpose.xlu0.b32.end [4/4] (short) (narrow) %v249_v26, 32 }
  0xe2   : > { %v946_v27 = vpop.permute.xlu0 %945 }
  0xe3   : > { %v948_v28 = vunpack.i.h.bf16 %v946_v27  ;;  %v947_v29 = vunpack.i.l.bf16 %v946_v27 }
  0xe5   : > { %v290_v30 = vsel %vm289_vm4, %v246_v22, %v947_v29  ;;  %v291_v31 = vsel %vm289_vm4, %v247_v24, %v948_v28 }
  0xe6   : > { %v951_v32 = vpop.permute.xlu0 %950  ;;  %v857_v33 = vpack.c.bf16 %v291_v31, %v290_v30 }
  0xe7   : > { %v953_v34 = vunpack.i.h.bf16 %v951_v32  ;;  %v952_v35 = vunpack.i.l.bf16 %v951_v32 }
  0xe8   : > { %858 = vmatprep.subr.bf16.mxu0 %v857_v33 }
  0xe9   : > { %860 = vmatpush3.bf16.msra.mxu0 %v857_v33  ;;  %v310_v36 = vpop.trf.xlu1  ;;  %v292_v37 = vsel %vm289_vm4, %v248_v25, %v952_v35  ;;  %v293_v38 = vsel %vm289_vm4, %v249_v26, %v953_v34 }
  0xea   : > { %v861_v39 = vpack.c.bf16 %v293_v38, %v292_v37  ;;  %837 = vmatprep.mubr.msk.f32.mxu0 %vm289_vm4, %v310_v36 }
  0xec   : > { %862 = vmatprep.subr.bf16.mxu0 %v861_v39 }
  0xed   : > { %864 = vmatpush3.bf16.msra.mxu0 %v861_v39  ;;  %v311_v40 = vpop.trf.xlu1 }
  0xf0   : > { %838 = vmatmul.mubr.msk.f32.vlgmr.msra.gmra.mrb[0].mxu0 %vm289_vm4, %v311_v40 }
  0xf1   : > { %v312_v41 = vpop.trf.xlu1 }
  0xf2   : > { %840 = vmatprep.mubr.msk.f32.mxu0 %vm289_vm4, %v312_v41 }
  0xf5   : > { %v313_v42 = vpop.trf.xlu1 }
  0xf6   : > { %841 = vmatmul.mubr.msk.f32.gmra.mrb[2].mxu0 %vm289_vm4, %v313_v42 }
 0x112   : > { %v439_v43 = vpop.trf.xlu0 }
 0x113   : > { %851 = vmatprep.mubr.msk.f32.mxu1 %vm289_vm4, %v439_v43 }
 0x116   : > { %v440_v44 = vpop.trf.xlu0 }
 0x117   : > { %852 = vmatmul.mubr.msk.f32.vlgmr.msra.gmra.mrb[0].mxu1 %vm289_vm4, %v440_v44 }
 0x11a   : > { %v441_v45 = vpop.trf.xlu0 }
 0x11b   : > { %854 = vmatprep.mubr.msk.f32.mxu1 %vm289_vm4, %v441_v45 }
 0x11e   : > { %v442_v46 = vpop.trf.xlu0 }
 0x11f   : > { %855 = vmatmul.mubr.msk.f32.gmra.mrb[2].mxu1 %vm289_vm4, %v442_v46 }
 0x1c3   : > { %v839_v47 = vpop.f32.mrb[0].mxu0 }
 0x1c4   : > { %564 = vrot.lane.b32.xlu1 %v839_v47, %s1119_s23  ;;  %v404_v48 = vpop.f32.mrb[1].mxu0 }
 0x1c8   : > { %562 = vrot.lane.b32.xlu1 %v404_v48, %s1119_s23 }
 0x1c9   : > { %v842_v49 = vpop.f32.mrb[2].mxu0 }
 0x1ca   : > { %v414_v50 = vpop.f32.mrb[3].mxu0 }
 0x1cb   : > { %566 = vrot.lane.b32.xlu0 %v414_v50, %s1119_s23 }
 0x1cc   : > { %568 = vrot.lane.b32.xlu1 %v842_v49, %s1119_s23 }
 0x1d0   : > { %596 = vrot.lane.b32.xlu1 %v588_v51, %s1119_s23 }
 0x1d4   : > { %598 = vrot.lane.b32.xlu1 %v589_v52, %s1119_s23 }
 0x1d8   : > { %600 = vrot.lane.b32.xlu1 %v590_v53, %s1119_s23 }
 0x1dc   : > { %602 = vrot.lane.b32.xlu1 %v591_v54, %s1119_s23 }
 0x1e0   : > { %624 = vrot.lane.b32.xlu1 %v1344_v3, %s1119_s23  ;;  %v556_v3 = vsel %vm263_vm2, %v553_v59, 0.0 }
 0x1e4   : > { %626 = vrot.lane.b32.xlu1 %v1351_v6, %s1119_s23 }
 0x1e8   : > { %628 = vrot.lane.b32.xlu1 %v1378_v14, %s1119_s23 }
 0x1ea   : > { %v853_v55 = vpop.f32.mrb[0].mxu1 }
 0x1eb   : > { %v533_v56 = vpop.f32.mrb[1].mxu1 }
 0x1ec   : > { %630 = vrot.lane.b32.xlu1 %v1394_v20, %s1119_s23 }
 0x1f0   : > { %955 = vrot.lane.b32.xlu1 %v1386_v17, %s1120_s10 }
 0x1f2   : > { %v856_v57 = vpop.f32.mrb[2].mxu1 }
 0x1f3   : > { %v543_v58 = vpop.f32.mrb[3].mxu1 }
 0x1f4   : > { %960 = vrot.lane.b32.xlu1 %v1391_v19, %s1120_s10 }
 0x236   : > { %v565_v61 = vpop.permute.xlu1 %564 }
 0x237   : > { %v575_v62 = vsel %vm289_vm4, %v555_v60, %v565_v61 }
 0x238   : > { %v580_v63 = vsel %vm578_vm5, %v575_v62, 0.0 }
 0x239   : > { %585 = vst.msk [vmem:[%s1447_s28 + $0x8] sm:$0xff] %vm583_vm6, %v580_v63 }
 0x23a   : > { %v563_v1 = vpop.permute.xlu1 %562 }
 0x23b   : > { %v574_v2 = vsel %vm289_vm4, %v554_v0, %v563_v1 }
 0x23c   : > { %v579_v6 = vsel %vm578_vm5, %v574_v2, 0.0 }
 0x23d   : > { %584 = vst.msk [vmem:[%s1447_s28] sm:$0xff] %vm583_vm6, %v579_v6  ;;  %v567_v7 = vpop.permute.xlu0 %566 }
 0x23e   : > { %v576_v8 = vsel %vm289_vm4, %v556_v3, %v567_v7  ;;  %v569_v11 = vpop.permute.xlu1 %568 }
 0x23f   : > { %v581_v12 = vsel %vm578_vm5, %v576_v8, 0.0  ;;  %v577_v9 = vsel %vm289_vm4, %v557_v4, %v569_v11 }
 0x240   : > { %586 = vst.msk [vmem:[%s1447_s28 + $0x10] sm:$0xff] %vm583_vm6, %v581_v12  ;;  %v582_v13 = vsel %vm578_vm5, %v577_v9, 0.0 }
 0x241   : > { %587 = vst.msk [vmem:[%s1447_s28 + $0x18] sm:$0xff] %vm583_vm6, %v582_v13 }
 0x242   : > { %v597_v5 = vpop.permute.xlu1 %596 }
 0x243   : > { %v608_v10 = vsel %vm289_vm4, %v533_v56, %v597_v5 }
 0x244   : > { %v612_v14 = vsel %vm578_vm5, %v608_v10, %v563_v1 }
 0x245   : > { %616 = vst.msk [vmem:[%s1447_s28 + $0x20] sm:$0xff] %vm583_vm6, %v612_v14 }
 0x246   : > { %v599_v15 = vpop.permute.xlu1 %598 }
 0x247   : > { %v609_v16 = vsel %vm289_vm4, %v853_v55, %v599_v15 }
 0x248   : > { %v613_v17 = vsel %vm578_vm5, %v609_v16, %v565_v61 }
 0x249   : > { %617 = vst.msk [vmem:[%s1447_s28 + $0x28] sm:$0xff] %vm583_vm6, %v613_v17 }
 0x24a   : > { %v601_v18 = vpop.permute.xlu1 %600 }
 0x24b   : > { %v610_v19 = vsel %vm289_vm4, %v543_v58, %v601_v18 }
 0x24c   : > { %v614_v20 = vsel %vm578_vm5, %v610_v19, %v567_v7 }
 0x24d   : > { %618 = vst.msk [vmem:[%s1447_s28 + $0x30] sm:$0xff] %vm583_vm6, %v614_v20 }
 0x24e   : > { %v603_v21 = vpop.permute.xlu1 %602 }
 0x24f   : > { %v611_v22 = vsel %vm289_vm4, %v856_v57, %v603_v21 }
 0x250   : > { %v615_v23 = vsel %vm578_vm5, %v611_v22, %v569_v11 }
 0x251   : > { %619 = vst.msk [vmem:[%s1447_s28 + $0x38] sm:$0xff] %vm583_vm6, %v615_v23 }
 0x252   : > { %v625_v24 = vpop.permute.xlu1 %624 }
 0x253   : > { %v648_v31 = vsel %vm289_vm4, 0.0, %v625_v24 }
 0x256   : > { %v627_v25 = vpop.permute.xlu1 %626 }
 0x257   : > { %v649_v32 = vsel %vm289_vm4, 0.0, %v627_v25 }
 0x25a   : > { %v629_v26 = vpop.permute.xlu1 %628 }
 0x25b   : > { %v650_v38 = vsel %vm289_vm4, 0.0, %v629_v26 }
 0x25e   : > { %v631_v27 = vpop.permute.xlu1 %630 }
 0x25f   : > { %v651_v39 = vsel %vm289_vm4, 0.0, %v631_v27 }
 0x262   : > { %v956_v28 = vpop.permute.xlu1 %955 }
 0x263   : > { %v958_v29 = vunpack.i.h.bf16 %v956_v28  ;;  %v957_v30 = vunpack.i.l.bf16 %v956_v28 }
 0x265   : > { %v653_v33 = vsel %vm578_vm5, %v649_v32, %v958_v29  ;;  %v652_v34 = vsel %vm578_vm5, %v648_v31, %v957_v30 }
 0x266   : > { %656 = vst.msk [vmem:[%s1447_s28 + $0x40] sm:$0xff] %vm583_vm6, %v652_v34  ;;  %657 = vst.msk [vmem:[%s1447_s28 + $0x48] sm:$0xff] %vm583_vm6, %v653_v33  ;;  %v961_v35 = vpop.permute.xlu1 %960 }
 0x267   : > { %v963_v36 = vunpack.i.h.bf16 %v961_v35  ;;  %v962_v37 = vunpack.i.l.bf16 %v961_v35 }
 0x269   : > { %v655_v40 = vsel %vm578_vm5, %v651_v39, %v963_v36  ;;  %v654_v41 = vsel %vm578_vm5, %v650_v38, %v962_v37 }
 0x26a   : > { %658 = vst.msk [vmem:[%s1447_s28 + $0x50] sm:$0xff] %vm583_vm6, %v654_v41  ;;  %659 = vst.msk [vmem:[%s1447_s28 + $0x58] sm:$0xff] %vm583_vm6, %v655_v40 }
 0x26b   : > { %1050 = shalt.err (!%p1047_p6)
}
 0x26c   : > { %s1051_s26 = scalar_lea.hbm %s1498_s17, 1536  ;;  %s1055_s10 = scalar_lea.hbm %s1554_s3, 6144 }
 0x26d   : > { %p1052_p12 = scmp.ne.s32.totalorder %s1498_s17, %s1051_s26  ;;  %p1056_p0 = scmp.lt.u32.totalorder %s1498_s17, %s1554_s3 }
 0x26e   : > { %p1057_p11 = scmp.lt.u32.totalorder %s1055_s10, %s1051_s26  ;;  %p1059_p13 = scmp.lt.u32.totalorder %s1051_s26, %s1498_s17 }
 0x26f   : > { %p1053_p8 = pnand %p1052_p12, %p1567_p2 }
 0x270   : > { %p1058_p7 = por %p1057_p11, %p1056_p0 }
 0x271   : > { %p1054_p5 = pneg %p1053_p8 }
 0x272   : > { %p1060_p3 = por %p1059_p13, %p1058_p7 }
 0x274   : > { %p1061_p9 = pnand %p1060_p3, %p1054_p5 }
 0x276   : > { %1064 = shalt.err (!%p1061_p9)
}
 0x277   : > { %s1122_s5 = smov 128   ;;  %s1123_s28 = smov 8  }
 0x278   : > { %883 = dma.vmem_to_hbm [thread:$0]  (%p1567_p2), %s1500_s11, 1536, %s1498_s17, %s661_s20, %s1122_s5, %s1122_s5, %s1123_s28  }
 0x279 PF: > { %p903_p10 = scmp.ge.s32.totalorder %s1111_s15, 2  ;;  %s689_s7 = sand.u32 1, %s1099_s12  }
 0x27a   : > { %p1568_p1 = scmp.ne.s32.totalorder %s1561_s25, 0  ;;  %s690_s16 = scalar_lea.sflag [#allocation4], %s689_s7 }
 0x27c   : > { %p897_p4 = pnand %p903_p10, %p1568_p1 }
 0x27e   : > { %1094 = dma.done.wait (!%p897_p4), %s690_s16, 1536  }
 0x27f   : > { %1096 = vsyncadd (!%p897_p4), %s690_s16, 4294965760  ;;  %p20_p6 = scmp.ge.s32.totalorder %s1169_s18, 6   ;;  %s1569_s12 = smov %s1103_s13 }
 0x280   : > { %s1570_s13 = smov %s1107_s14  ;;  %s1571_s14 = smov %s1181_s21 }
 0x281   : > { %s1572_s15 = smov %s1169_s18  ;;  %22 = sbr.rel (!%p20_p6) target bundleno = 8 (0x8), region = 95 }
 0x288   :  { %695 = vsyncpa [#allocation3], 1 }
 0x289   :  { %697 = vsyncpa [#allocation3 + $0x1], 1 }
 0x28a   :  { %698 = vsyncpa [#allocation8], 1 }
 0x28b   :  { %700 = vsyncpa [#allocation8 + $0x1], 1 }
 0x28c   :  { %701 = vsyncpa [#allocation4], 1 }
 0x28d   :  { %703 = vsyncpa [#allocation4 + $0x1], 1 }
 0x28e   :  { %704 = vsyncpa [#allocation5], 1 }
 0x28f   :  { %706 = vsyncpa [#allocation5 + $0x1], 1 }

</bundles_post_ra>
